<compile_context>
chip_gen: v7x
topology: tpu7x:2x2x1
jax: 0.10.0
libtpu: 0.0.40
codegen_flags: <defaults>
</compile_context>

<pallas_src>
import functools

import jax
import jax.numpy as jnp
from jax.experimental import pallas as pl
from jax.experimental.pallas import tpu as pltpu

IN_FEATURES = 28 * 28          # 784
L0_OUT = 512
HIDDEN_SIZE = 50
OUT_FEATURES = 10

HIDDEN_PAD = 128               # 50 -> 128 (lane multiple)
OUT_PAD = 128                  # 10 -> 128 (lane multiple)

DEFAULT_TM = 1024              # batch tile (rows per grid step)


def _round_up(x, m):
    return ((x + m - 1) // m) * m


def _mlp_kernel(x_ref, w0_ref, b0_ref, w1_ref, b1_ref, w2_ref, b2_ref, o_ref):
    # Cast x -> bf16 in-kernel (no separate XLA cast pass over x in HBM).
    x = x_ref[...].astype(jnp.bfloat16)

    # Layer 0: (TM, 784) @ (784, 512) + b0, ReLU. f32 MXU accumulation.
    h0 = jnp.dot(x, w0_ref[...], preferred_element_type=jnp.float32)
    h0 = jnp.maximum(h0 + b0_ref[...], 0.0)
    h0 = h0.astype(jnp.bfloat16)

    # Layer 1: (TM, 512) @ (512, 128pad) + b1, ReLU. Padded cols stay exactly 0.
    h1 = jnp.dot(h0, w1_ref[...], preferred_element_type=jnp.float32)
    h1 = jnp.maximum(h1 + b1_ref[...], 0.0)
    h1 = h1.astype(jnp.bfloat16)

    # Layer 2: (TM, 128pad) @ (128pad, 128pad) + b2 (logits, no activation).
    out = jnp.dot(h1, w2_ref[...], preferred_element_type=jnp.float32)
    o_ref[...] = (out + b2_ref[...]).astype(o_ref.dtype)   # bf16 writeback


@functools.partial(jax.jit, static_argnames=("tm",))
def _run_kernel(x_pad, params, tm):
    """x_pad: (B_pad, 784), B_pad a multiple of tm. Returns (B_pad, 128) bf16."""
    w0, b0, w1, b1, w2, b2 = params
    b_pad = x_pad.shape[0]
    grid = (b_pad // tm,)

    resident = lambda i: (0, 0)     # weights/biases: same block every step
    batched = lambda i: (i, 0)      # x / out: walk the batch tiles

    x_bytes = b_pad * IN_FEATURES * jnp.dtype(x_pad.dtype).itemsize
    flops = 2 * b_pad * (IN_FEATURES * L0_OUT + L0_OUT * HIDDEN_PAD + HIDDEN_PAD * OUT_PAD)
    bytes_accessed = (
        x_bytes                                       # x (f32 or bf16)
        + IN_FEATURES * L0_OUT * 2                    # w0 (bf16)
        + L0_OUT * HIDDEN_PAD * 2                     # w1 (bf16)
        + HIDDEN_PAD * OUT_PAD * 2                    # w2 (bf16)
        + (L0_OUT + HIDDEN_PAD + OUT_PAD) * 4         # biases (f32)
        + b_pad * OUT_PAD * 2                         # out (bf16)
    )

    return pl.pallas_call(
        _mlp_kernel,
        out_shape=jax.ShapeDtypeStruct((b_pad, OUT_PAD), jnp.bfloat16),
        grid_spec=pltpu.PrefetchScalarGridSpec(
            num_scalar_prefetch=0,
            grid=grid,
            in_specs=[
                pl.BlockSpec((tm, IN_FEATURES), batched),        # x
                pl.BlockSpec((IN_FEATURES, L0_OUT), resident),   # w0
                pl.BlockSpec((1, L0_OUT), resident),             # b0
                pl.BlockSpec((L0_OUT, HIDDEN_PAD), resident),    # w1
                pl.BlockSpec((1, HIDDEN_PAD), resident),         # b1
                pl.BlockSpec((HIDDEN_PAD, OUT_PAD), resident),   # w2
                pl.BlockSpec((1, OUT_PAD), resident),            # b2
            ],
            out_specs=pl.BlockSpec((tm, OUT_PAD), batched),
        ),
        compiler_params=pltpu.CompilerParams(
            dimension_semantics=("parallel",),        # shard grid over 2 TCs on v7x
            vmem_limit_bytes=40 * 1024 * 1024,        # ~15 MiB peak at TM=1024
        ),
        cost_estimate=pl.CostEstimate(
            flops=flops, transcendentals=0, bytes_accessed=bytes_accessed),
    )(x_pad, w0, b0, w1, b1, w2, b2)


def network_forward(x, params, *, tm=DEFAULT_TM):
    """Reproduces Network.forward.

    x: any array whose trailing dims flatten to multiples of 784
       (e.g. (B, 1, 28, 28), (1, 28, 28), (B, 784)), f32 or bf16.
    params: padded kernel params from prepare_params().
    Returns f32 logits of shape (B, 10).
    """
    x = jnp.asarray(x)
    if x.dtype not in (jnp.float32, jnp.bfloat16):
        x = x.astype(jnp.float32)
    if x.ndim < 4:
        x = x[None, ...]                  # unsqueeze(0)
    x = x.reshape(-1, IN_FEATURES)        # (-1, 784)
    batch = x.shape[0]

    # Batch tile: at most `tm`, capped at ceil(batch/2) (rounded to 16) so the
    # grid has >= 2 steps whenever the batch allows (both v7x cores get work).
    half = _round_up(max(1, -(-batch // 2)), 16)
    tm_eff = max(16, min(tm, half))
    b_pad = _round_up(batch, tm_eff)
    if b_pad != batch:
        x = jnp.pad(x, ((0, b_pad - batch), (0, 0)))

    out_pad = _run_kernel(x, params, tm_eff)     # (B_pad, 128) bf16
    return out_pad[:batch, :OUT_FEATURES].astype(jnp.float32)


def init_params(key, hidden_size=HIDDEN_SIZE):
    """Deterministic logical params (uniform, PyTorch-Linear-style bounds).

    Returned as (in, out) f32 weights and (out,) f32 biases (unpadded).
    """
    def linear(key, fan_in, fan_out):
        kw, kb = jax.random.split(key)
        bound = 1.0 / jnp.sqrt(jnp.float32(fan_in))
        w = jax.random.uniform(kw, (fan_in, fan_out), jnp.float32, -bound, bound)
        b = jax.random.uniform(kb, (fan_out,), jnp.float32, -bound, bound)
        return w, b

    k0, k1, k2 = jax.random.split(key, 3)
    w0, b0 = linear(k0, IN_FEATURES, L0_OUT)
    w1, b1 = linear(k1, L0_OUT, hidden_size)
    w2, b2 = linear(k2, hidden_size, OUT_FEATURES)
    return (w0, b0, w1, b1, w2, b2)


def prepare_params(raw_params):
    """Pad narrow dims to 128 lanes and cast weights to bf16 (biases stay f32)."""
    w0, b0, w1, b1, w2, b2 = raw_params
    hidden = w1.shape[1]

    w1p = jnp.zeros((L0_OUT, HIDDEN_PAD), jnp.float32).at[:, :hidden].set(w1)
    b1p = jnp.zeros((1, HIDDEN_PAD), jnp.float32).at[0, :hidden].set(b1)
    w2p = jnp.zeros((HIDDEN_PAD, OUT_PAD), jnp.float32).at[:hidden, :OUT_FEATURES].set(w2)
    b2p = jnp.zeros((1, OUT_PAD), jnp.float32).at[0, :OUT_FEATURES].set(b2)

    return (
        w0.astype(jnp.bfloat16),
        b0.reshape(1, L0_OUT).astype(jnp.float32),
        w1p.astype(jnp.bfloat16),
        b1p,
        w2p.astype(jnp.bfloat16),
        b2p,
    )


def _reference_forward(x, raw_params):
    """Pure-JAX f32 reference of Network.forward (for correctness check)."""
    w0, b0, w1, b1, w2, b2 = raw_params
    x = jnp.asarray(x, jnp.float32)
    if x.ndim < 4:
        x = x[None, ...]
    x = x.reshape(-1, IN_FEATURES)
    h0 = jnp.maximum(x @ w0 + b0, 0.0)
    h1 = jnp.maximum(h0 @ w1 + b1, 0.0)
    return h1 @ w2 + b2


if __name__ == "__main__":
    key = jax.random.PRNGKey(0)
    k_in, k_in2, k_param = jax.random.split(key, 3)

    raw_params = init_params(k_param, hidden_size=HIDDEN_SIZE)
    params = prepare_params(raw_params)

    # Small MNIST-like batch: (B=2, C=1, H=28, W=28), NCHW like PyTorch.
    x = jax.random.normal(k_in, (2, 1, 28, 28), jnp.float32)
    out = network_forward(x, params)
    jax.block_until_ready(out)

    assert out.shape == (2, 10), out.shape
    assert out.dtype == jnp.float32, out.dtype
    assert bool(jnp.all(jnp.isfinite(out)))

    ref = _reference_forward(x, raw_params)
    assert bool(jnp.allclose(out, ref, rtol=3e-2, atol=3e-2)), (
        float(jnp.max(jnp.abs(out - ref))))

    # Second case: ragged batch (exercises padding + multi-step grid path).
    x2 = jax.random.normal(k_in2, (40, 1, 28, 28), jnp.float32)
    out2 = network_forward(x2, params)
    jax.block_until_ready(out2)
    ref2 = _reference_forward(x2, raw_params)
    assert out2.shape == (40, 10), out2.shape
    assert bool(jnp.allclose(out2, ref2, rtol=3e-2, atol=3e-2)), (
        float(jnp.max(jnp.abs(out2 - ref2))))

    print("KERNEL_OK")
</pallas_src>

<mosaic_0001>
module attributes {stable_mosaic.version = 11 : i64} {
  func.func @_mlp_kernel(%arg0: i32, %arg1: memref<16x784xf32, #tpu.memory_space<vmem>>, %arg2: memref<784x512xbf16, #tpu.memory_space<vmem>>, %arg3: memref<1x512xf32, #tpu.memory_space<vmem>>, %arg4: memref<512x128xbf16, #tpu.memory_space<vmem>>, %arg5: memref<1x128xf32, #tpu.memory_space<vmem>>, %arg6: memref<128x128xbf16, #tpu.memory_space<vmem>>, %arg7: memref<1x128xf32, #tpu.memory_space<vmem>>, %arg8: memref<16x128xbf16, #tpu.memory_space<vmem>>) attributes {dimension_semantics = [#tpu.dimension_semantics<parallel>], iteration_bounds = array<i64: 1>, scalar_prefetch = 0 : i64, scratch_operands = 0 : i64, tpu.core_type = #tpu.core_type<tc>, window_params = [{transform_indices = @transform_0, window_bounds = array<i64: 16, 784>}, {pipeline_mode = #tpu.pipeline_mode<synchronous>, transform_indices = @transform_1, window_bounds = array<i64: 784, 512>}, {pipeline_mode = #tpu.pipeline_mode<synchronous>, transform_indices = @transform_2, window_bounds = array<i64: 1, 512>}, {pipeline_mode = #tpu.pipeline_mode<synchronous>, transform_indices = @transform_3, window_bounds = array<i64: 512, 128>}, {pipeline_mode = #tpu.pipeline_mode<synchronous>, transform_indices = @transform_4, window_bounds = array<i64: 1, 128>}, {pipeline_mode = #tpu.pipeline_mode<synchronous>, transform_indices = @transform_5, window_bounds = array<i64: 128, 128>}, {pipeline_mode = #tpu.pipeline_mode<synchronous>, transform_indices = @transform_6, window_bounds = array<i64: 1, 128>}, {transform_indices = @transform_7, window_bounds = array<i64: 16, 128>}]} {
    %c0 = arith.constant 0 : index
    %c0_0 = arith.constant 0 : index
    %0 = vector.load %arg1[%c0, %c0_0] : memref<16x784xf32, #tpu.memory_space<vmem>>, vector<16x784xf32>
    %1 = arith.truncf %0 : vector<16x784xf32> to vector<16x784xbf16>
    %c0_1 = arith.constant 0 : index
    %c0_2 = arith.constant 0 : index
    %2 = vector.load %arg2[%c0_1, %c0_2] : memref<784x512xbf16, #tpu.memory_space<vmem>>, vector<784x512xbf16>
    %cst = arith.constant dense<0.000000e+00> : vector<16x512xf32>
    %3 = tpu.matmul %1, %2, %cst {dimension_numbers = #tpu.dot_dimension_numbers<[1], [0], [0], [1], [0, 0, 1, 1], [], []>} : vector<16x784xbf16>, vector<784x512xbf16>, vector<16x512xf32> -> vector<16x512xf32>
    %c0_3 = arith.constant 0 : index
    %c0_4 = arith.constant 0 : index
    %4 = vector.load %arg3[%c0_3, %c0_4] : memref<1x512xf32, #tpu.memory_space<vmem>>, vector<1x512xf32>
    %5 = vector.broadcast %4 : vector<1x512xf32> to vector<16x512xf32>
    %6 = arith.addf %3, %5 : vector<16x512xf32>
    %cst_5 = arith.constant 0.000000e+00 : f32
    %7 = vector.broadcast %cst_5 : f32 to vector<16x512xf32>
    %8 = arith.maximumf %6, %7 : vector<16x512xf32>
    %9 = arith.truncf %8 : vector<16x512xf32> to vector<16x512xbf16>
    %c0_6 = arith.constant 0 : index
    %c0_7 = arith.constant 0 : index
    %10 = vector.load %arg4[%c0_6, %c0_7] : memref<512x128xbf16, #tpu.memory_space<vmem>>, vector<512x128xbf16>
    %cst_8 = arith.constant dense<0.000000e+00> : vector<16x128xf32>
    %11 = tpu.matmul %9, %10, %cst_8 {dimension_numbers = #tpu.dot_dimension_numbers<[1], [0], [0], [1], [0, 0, 1, 1], [], []>} : vector<16x512xbf16>, vector<512x128xbf16>, vector<16x128xf32> -> vector<16x128xf32>
    %c0_9 = arith.constant 0 : index
    %c0_10 = arith.constant 0 : index
    %12 = vector.load %arg5[%c0_9, %c0_10] : memref<1x128xf32, #tpu.memory_space<vmem>>, vector<1x128xf32>
    %13 = vector.broadcast %12 : vector<1x128xf32> to vector<16x128xf32>
    %14 = arith.addf %11, %13 : vector<16x128xf32>
    %cst_11 = arith.constant 0.000000e+00 : f32
    %15 = vector.broadcast %cst_11 : f32 to vector<16x128xf32>
    %16 = arith.maximumf %14, %15 : vector<16x128xf32>
    %17 = arith.truncf %16 : vector<16x128xf32> to vector<16x128xbf16>
    %c0_12 = arith.constant 0 : index
    %c0_13 = arith.constant 0 : index
    %18 = vector.load %arg6[%c0_12, %c0_13] : memref<128x128xbf16, #tpu.memory_space<vmem>>, vector<128x128xbf16>
    %cst_14 = arith.constant dense<0.000000e+00> : vector<16x128xf32>
    %19 = tpu.matmul %17, %18, %cst_14 {dimension_numbers = #tpu.dot_dimension_numbers<[1], [0], [0], [1], [0, 0, 1, 1], [], []>} : vector<16x128xbf16>, vector<128x128xbf16>, vector<16x128xf32> -> vector<16x128xf32>
    %c0_15 = arith.constant 0 : index
    %c0_16 = arith.constant 0 : index
    %20 = vector.load %arg7[%c0_15, %c0_16] : memref<1x128xf32, #tpu.memory_space<vmem>>, vector<1x128xf32>
    %21 = vector.broadcast %20 : vector<1x128xf32> to vector<16x128xf32>
    %22 = arith.addf %19, %21 : vector<16x128xf32>
    %23 = arith.truncf %22 : vector<16x128xf32> to vector<16x128xbf16>
    %c0_17 = arith.constant 0 : index
    %c0_18 = arith.constant 0 : index
    %24 = vector.load %arg8[%c0_17, %c0_18] : memref<16x128xbf16, #tpu.memory_space<vmem>>, vector<16x128xbf16>
    tpu.vector_store %arg8[%c0_17, %c0_18], %23 {strides = array<i32>} : memref<16x128xbf16, #tpu.memory_space<vmem>>, vector<16x128xbf16>,
    return
  }
  func.func @transform_0(%arg0: i32) -> (i32, i32) {
    %c0_i32 = arith.constant 0 : i32
    %c0_i32_0 = arith.constant 0 : i32
    return %arg0, %c0_i32 : i32, i32
  }
  func.func @transform_1(%arg0: i32) -> (i32, i32) {
    %c0_i32 = arith.constant 0 : i32
    %c0_i32_0 = arith.constant 0 : i32
    %c0_i32_1 = arith.constant 0 : i32
    return %c0_i32, %c0_i32_0 : i32, i32
  }
  func.func @transform_2(%arg0: i32) -> (i32, i32) {
    %c0_i32 = arith.constant 0 : i32
    %c0_i32_0 = arith.constant 0 : i32
    %c0_i32_1 = arith.constant 0 : i32
    return %c0_i32, %c0_i32_0 : i32, i32
  }
  func.func @transform_3(%arg0: i32) -> (i32, i32) {
    %c0_i32 = arith.constant 0 : i32
    %c0_i32_0 = arith.constant 0 : i32
    %c0_i32_1 = arith.constant 0 : i32
    return %c0_i32, %c0_i32_0 : i32, i32
  }
  func.func @transform_4(%arg0: i32) -> (i32, i32) {
    %c0_i32 = arith.constant 0 : i32
    %c0_i32_0 = arith.constant 0 : i32
    %c0_i32_1 = arith.constant 0 : i32
    return %c0_i32, %c0_i32_0 : i32, i32
  }
  func.func @transform_5(%arg0: i32) -> (i32, i32) {
    %c0_i32 = arith.constant 0 : i32
    %c0_i32_0 = arith.constant 0 : i32
    %c0_i32_1 = arith.constant 0 : i32
    return %c0_i32, %c0_i32_0 : i32, i32
  }
  func.func @transform_6(%arg0: i32) -> (i32, i32) {
    %c0_i32 = arith.constant 0 : i32
    %c0_i32_0 = arith.constant 0 : i32
    %c0_i32_1 = arith.constant 0 : i32
    return %c0_i32, %c0_i32_0 : i32, i32
  }
  func.func @transform_7(%arg0: i32) -> (i32, i32) {
    %c0_i32 = arith.constant 0 : i32
    %c0_i32_0 = arith.constant 0 : i32
    return %arg0, %c0_i32 : i32, i32
  }
}

</mosaic_0001>

<bundles_post_ra>
// kernel: _run_kernel.1
= control target key start
LH: loop header
LB: loop body
LE: loop exit
PB: predicated region body
PF: predicated region fallthrough
CT: control target
= control target key end

     0   :  { %12 = vsyncpa [#allocation3], 0  ;;  %s3120_s0 = inlined_call_operand.hbm [shape: f32[16,784], index: 0, kind: input, shape index: {}]   ;;  %s3121_s1 = inlined_call_operand.hbm [shape: bf16[784,512], index: 1, kind: input, shape index: {}]   ;;  %s3122_s2 = inlined_call_operand.vmem [shape: f32[1,512], index: 2, kind: input, shape index: {}]   ;;  %s3123_s3 = inlined_call_operand.hbm [shape: bf16[512,128], index: 3, kind: input, shape index: {}]   ;;  %s3124_s4 = inlined_call_operand.vmem [shape: f32[1,128], index: 4, kind: input, shape index: {}]   ;;  %s3125_s5 = inlined_call_operand.hbm [shape: bf16[128,128], index: 5, kind: input, shape index: {}]   ;;  %s3126_s6 = inlined_call_operand.vmem [shape: f32[1,128], index: 6, kind: input, shape index: {}]   ;;  %s3127_s7 = inlined_call_operand.hbm [shape: bf16[16,128], index: 7, kind: output, shape index: {}]  }
   0x1   :  { %13 = vsyncpa [#allocation6], 0 }
   0x2   :  { %14 = vsyncpa [#allocation9], 0 }
   0x3   :  { %15 = vsyncpa [#allocation4], 0  ;;  %s2971_s24 = smov [#allocation5]   ;;  %s2853_s28 = scalar_lea.hbm %s3121_s1, 25088 }
   0x4   :  { %s33_s25 = sshll.u32 %s2971_s24, 4  ;;  %p2854_p0 = scmp.ne.s32.totalorder %s3121_s1, %s2853_s28  ;;  %s34_s25 = int_to_ptr.vmem [resolvable:$true] %s33_s25 }
   0x5   :  { %p2857_p1 = scmp.lt.u32.totalorder %s2853_s28, %s3121_s1 }
   0x7   :  { %p2859_p2 = pnand %p2857_p1, %p2854_p0 }
   0x9   :  { %2862 = shalt.err (!%p2859_p2)
}
   0xa   :  { %s2863_s10 = scalar_lea.vmem %s34_s25, 25088  ;;  %p2868_p4 = scmp.lt.s32.totalorder %s34_s25, %s34_s25 }
   0xb   :  { %p2864_p3 = scmp.ne.s32.totalorder %s34_s25, %s2863_s10  ;;  %p2869_p5 = scmp.lt.s32.totalorder %s2863_s10, %s2863_s10 }
   0xd   :  { %p2870_p6 = por %p2869_p5, %p2868_p4 }
   0xf   :  { %p2871_p7 = pnand %p2870_p6, %p2864_p3 }
  0x11   :  { %2874 = shalt.err (!%p2871_p7)
}
  0x12   :  { %s2972_s11 = smov 256   ;;  %s2973_s12 = smov 16  }
  0x13   :  { %39 = dma.hbm_to_vmem [thread:$0]  %s3121_s1, 25088, %s34_s25, [#allocation6], %s2972_s11, %s2972_s11, %s2973_s12  }
  0x14   :  { %s2974_s15 = smov [#allocation2]   ;;  %s2875_s19 = scalar_lea.hbm %s3120_s0, 1792 }
  0x15   :  { %s21_s16 = sshll.u32 %s2974_s15, 4  ;;  %p2876_p8 = scmp.ne.s32.totalorder %s3120_s0, %s2875_s19  ;;  %s22_s16 = int_to_ptr.vmem [resolvable:$true] %s21_s16 }
  0x16   :  { %p2879_p9 = scmp.lt.u32.totalorder %s2875_s19, %s3120_s0 }
  0x18   :  { %p2881_p10 = pnand %p2879_p9, %p2876_p8 }
  0x1a   :  { %2884 = shalt.err (!%p2881_p10)
}
  0x1b   :  { %s2885_s24 = scalar_lea.vmem %s22_s16, 1792  ;;  %p2890_p12 = scmp.lt.s32.totalorder %s22_s16, %s22_s16 }
  0x1c   :  { %p2886_p11 = scmp.ne.s32.totalorder %s22_s16, %s2885_s24  ;;  %p2891_p13 = scmp.lt.s32.totalorder %s2885_s24, %s2885_s24 }
  0x1e   :  { %p2892_p0 = por %p2891_p13, %p2890_p12 }
  0x20   :  { %p2893_p1 = pnand %p2892_p0, %p2886_p11 }
  0x22   :  { %2896 = shalt.err (!%p2893_p1)
}
  0x23   :  { %s2975_s1 = smov 896   ;;  %s2976_s25 = smov 56  }
  0x24   :  { %27 = dma.hbm_to_vmem [thread:$0]  %s3120_s0, 1792, %s22_s16, [#allocation3], %s2975_s1, %s2975_s1, %s2976_s25  }
  0x25   :  { %s2977_s28 = smov [#allocation7]   ;;  %s2897_s9 = scalar_lea.hbm %s3123_s3, 4096 }
  0x26   :  { %s47_s29 = sshll.u32 %s2977_s28, 4  ;;  %p2898_p2 = scmp.ne.s32.totalorder %s3123_s3, %s2897_s9  ;;  %s48_s29 = int_to_ptr.vmem [resolvable:$true] %s47_s29 }
  0x27   :  { %p2901_p3 = scmp.lt.u32.totalorder %s2897_s9, %s3123_s3 }
  0x29   :  { %p2903_p4 = pnand %p2901_p3, %p2898_p2 }
  0x2b   :  { %2906 = shalt.err (!%p2903_p4)
}
  0x2c   :  { %s2907_s14 = scalar_lea.vmem %s48_s29, 4096  ;;  %p2912_p6 = scmp.lt.s32.totalorder %s48_s29, %s48_s29 }
  0x2d   :  { %p2908_p5 = scmp.ne.s32.totalorder %s48_s29, %s2907_s14  ;;  %p2913_p7 = scmp.lt.s32.totalorder %s2907_s14, %s2907_s14 }
  0x2f   :  { %p2914_p8 = por %p2913_p7, %p2912_p6 }
  0x31   :  { %p2915_p9 = pnand %p2914_p8, %p2908_p5 }
  0x33   :  { %2918 = shalt.err (!%p2915_p9)
}
  0x34   :  { %s2978_s0 = smov 64   ;;  %s2979_s15 = smov 4  }
  0x35   :  { %53 = dma.hbm_to_vmem [thread:$0]  %s3123_s3, 4096, %s48_s29, [#allocation6], %s2978_s0, %s2978_s0, %s2979_s15  }
  0x36   :  { %s2980_s18 = smov [#allocation8]   ;;  %s2919_s22 = scalar_lea.hbm %s3125_s5, 1024 }
  0x37   :  { %s61_s19 = sshll.u32 %s2980_s18, 4  ;;  %p2920_p10 = scmp.ne.s32.totalorder %s3125_s5, %s2919_s22  ;;  %s62_s19 = int_to_ptr.vmem [resolvable:$true] %s61_s19 }
  0x38   :  { %p2923_p11 = scmp.lt.u32.totalorder %s2919_s22, %s3125_s5 }
  0x3a   :  { %p2925_p12 = pnand %p2923_p11, %p2920_p10 }
  0x3c   :  { %2928 = shalt.err (!%p2925_p12)
}
  0x3d   :  { %s2929_s26 = scalar_lea.vmem %s62_s19, 1024  ;;  %p2934_p0 = scmp.lt.s32.totalorder %s62_s19, %s62_s19 }
  0x3e   :  { %p2930_p13 = scmp.ne.s32.totalorder %s62_s19, %s2929_s26  ;;  %p2935_p1 = scmp.lt.s32.totalorder %s2929_s26, %s2929_s26 }
  0x40   :  { %p2936_p2 = por %p2935_p1, %p2934_p0 }
  0x42   :  { %p2937_p3 = pnand %p2936_p2, %p2930_p13 }
  0x44   :  { %2940 = shalt.err (!%p2937_p3)
}
  0x45   :  { %67 = dma.hbm_to_vmem [thread:$0]  %s3125_s5, 1024, %s62_s19, [#allocation9], %s2978_s0, %s2978_s0, %s2979_s15  }
  0x46   :  { %2963 = dma.done.wait [#allocation3], 1792  }
  0x47   :  { %2964 = vsyncadd [#allocation3], 4294965504 }
  0x48   :  { %2965 = dma.done.wait [#allocation6], 29184  }
  0x49   :  { %2966 = vsyncadd [#allocation6], 4294938112 }
  0x4a   :  { %2967 = dma.done.wait [#allocation9], 1024  }
  0x4b   :  { %2968 = vsyncadd [#allocation9], 4294966272  ;;  %v2981_v0 = vmov 0   ;;  %v2519_v1 = vld [vmem:[#allocation5 + $0x4] ss:$16 sps:$4 sm:$0xff]   ;;  %v96_v7 = vld [vmem:[#allocation2 + $0x68] sm:$0xff] }
  0x4c   :  { %1467 = vmatprep.mubr.bf16.mxu1 %v2981_v0  ;;  %v2521_v2 = vld [vmem:[#allocation5 + $0x604] ss:$16 sps:$4 sm:$0xff]   ;;  %1306 = vmatprep.subr.bf16.mxu0 %v2519_v1  ;;  %v2523_v3 = vld [vmem:[#allocation5] ss:$16 sps:$4 sm:$0xff]   ;;  %vm1302_vm0 = vcmask 130048   ;;  %v84_v52 = vld [vmem:[#allocation2 + $0x8] sm:$0xff] }
  0x4d   :  { %v2524_v4 = vld [vmem:[#allocation5 + $0x600] ss:$16 sps:$4 sm:$0xff]   ;;  %1435 = vmatprep.subr.bf16.mxu1 %v2521_v2  ;;  %v2525_v5 = vld [vmem:[#allocation5 + $0x24] ss:$16 sps:$4 sm:$0xff]   ;;  %1307 = vmatpush1.bf16.msra.mxu0 %v2523_v3  ;;  %v2527_v9 = vld [vmem:[#allocation5 + $0x8] ss:$16 sps:$4 sm:$0xff]  }
  0x4e   :  { %v89_v6 = vld [vmem:[#allocation2 + $0x30] sm:$0xff]  ;;  %1436 = vmatpush1.bf16.msra.mxu1 %v2524_v4  ;;  %1308 = vmatprep.subr.bf16.mxu0 %v2525_v5  ;;  %v2529_v10 = vld [vmem:[#allocation5 + $0xc] ss:$16 sps:$4 sm:$0xff]   ;;  %v2533_v13 = vld [vmem:[#allocation5 + $0x28] ss:$16 sps:$4 sm:$0xff]   ;;  %vm2983_vm1 = vmmov 0  }
  0x4f   :  { %v3080_v8 = vpack.c.bf16 %v96_v7, %v89_v6  ;;  %v2530_v11 = vld [vmem:[#allocation5 + $0x20] ss:$16 sps:$4 sm:$0xff]   ;;  %v2531_v12 = vld [vmem:[#allocation5 + $0x44] ss:$16 sps:$4 sm:$0xff]   ;;  %1478 = vmatprep.subr.bf16.mxu1 %v2529_v10  ;;  %v2535_v14 = vld [vmem:[#allocation5 + $0x2c] ss:$16 sps:$4 sm:$0xff]  }
  0x50   :  { %v2536_v15 = vld [vmem:[#allocation5 + $0x40] ss:$16 sps:$4 sm:$0xff]   ;;  %v2537_v16 = vld [vmem:[#allocation5 + $0x64] ss:$16 sps:$4 sm:$0xff]   ;;  %v2541_v17 = vld [vmem:[#allocation5 + $0x4c] ss:$16 sps:$4 sm:$0xff]  }
  0x51   :  { %2347 = vmatmul.mubr.msk.bf16.vlgmr.msra.gmra.mrb[0].mxu1 %vm1302_vm0, %v3080_v8  ;;  %1309 = vmatpush1.bf16.msra.mxu0 %v2530_v11  ;;  %v2539_v18 = vld [vmem:[#allocation5 + $0x48] ss:$16 sps:$4 sm:$0xff]   ;;  %v2542_v19 = vld [vmem:[#allocation5 + $0x60] ss:$16 sps:$4 sm:$0xff]   ;;  %v2543_v20 = vld [vmem:[#allocation5 + $0x84] ss:$16 sps:$4 sm:$0xff]  }
  0x52   :  { %1479 = vmatpush1.bf16.msra.mxu1 %v2527_v9  ;;  %1310 = vmatprep.subr.bf16.mxu0 %v2531_v12  ;;  %v2547_v21 = vld [vmem:[#allocation5 + $0x6c] ss:$16 sps:$4 sm:$0xff]   ;;  %v2545_v22 = vld [vmem:[#allocation5 + $0x68] ss:$16 sps:$4 sm:$0xff]   ;;  %v2548_v23 = vld [vmem:[#allocation5 + $0x80] ss:$16 sps:$4 sm:$0xff]  }
  0x53   :  { %1480 = vmatprep.subr.bf16.mxu1 %v2535_v14  ;;  %v2549_v24 = vld [vmem:[#allocation5 + $0xa4] ss:$16 sps:$4 sm:$0xff]   ;;  %v2553_v25 = vld [vmem:[#allocation5 + $0x8c] ss:$16 sps:$4 sm:$0xff]   ;;  %v2551_v26 = vld [vmem:[#allocation5 + $0x88] ss:$16 sps:$4 sm:$0xff]  }
  0x54   :  { %v2554_v27 = vld [vmem:[#allocation5 + $0xa0] ss:$16 sps:$4 sm:$0xff]   ;;  %v2555_v28 = vld [vmem:[#allocation5 + $0xc4] ss:$16 sps:$4 sm:$0xff]   ;;  %v2559_v29 = vld [vmem:[#allocation5 + $0xac] ss:$16 sps:$4 sm:$0xff]  }
  0x55   :  { %1311 = vmatpush1.bf16.msra.mxu0 %v2536_v15  ;;  %v2557_v30 = vld [vmem:[#allocation5 + $0xa8] ss:$16 sps:$4 sm:$0xff]   ;;  %v2560_v31 = vld [vmem:[#allocation5 + $0xc0] ss:$16 sps:$4 sm:$0xff]   ;;  %v2561_v32 = vld [vmem:[#allocation5 + $0xe4] ss:$16 sps:$4 sm:$0xff]  }
  0x56   :  { %1481 = vmatpush1.bf16.msra.mxu1 %v2533_v13  ;;  %1312 = vmatprep.subr.bf16.mxu0 %v2537_v16  ;;  %v2565_v33 = vld [vmem:[#allocation5 + $0xcc] ss:$16 sps:$4 sm:$0xff]   ;;  %v2563_v34 = vld [vmem:[#allocation5 + $0xc8] ss:$16 sps:$4 sm:$0xff]   ;;  %v2566_v35 = vld [vmem:[#allocation5 + $0xe0] ss:$16 sps:$4 sm:$0xff]  }
  0x57   :  { %1482 = vmatprep.subr.bf16.mxu1 %v2541_v17  ;;  %v2567_v36 = vld [vmem:[#allocation5 + $0x104] ss:$16 sps:$4 sm:$0xff]   ;;  %v2571_v37 = vld [vmem:[#allocation5 + $0xec] ss:$16 sps:$4 sm:$0xff]   ;;  %v2569_v38 = vld [vmem:[#allocation5 + $0xe8] ss:$16 sps:$4 sm:$0xff]  }
  0x58   :  { %v2572_v39 = vld [vmem:[#allocation5 + $0x100] ss:$16 sps:$4 sm:$0xff]   ;;  %v2573_v40 = vld [vmem:[#allocation5 + $0x124] ss:$16 sps:$4 sm:$0xff]   ;;  %v2577_v41 = vld [vmem:[#allocation5 + $0x10c] ss:$16 sps:$4 sm:$0xff]  }
  0x59   :  { %1313 = vmatpush1.bf16.msra.mxu0 %v2542_v19  ;;  %v2575_v42 = vld [vmem:[#allocation5 + $0x108] ss:$16 sps:$4 sm:$0xff]   ;;  %v2578_v43 = vld [vmem:[#allocation5 + $0x120] ss:$16 sps:$4 sm:$0xff]   ;;  %v2579_v44 = vld [vmem:[#allocation5 + $0x144] ss:$16 sps:$4 sm:$0xff]  }
  0x5a   :  { %1483 = vmatpush1.bf16.msra.mxu1 %v2539_v18  ;;  %1314 = vmatprep.subr.bf16.mxu0 %v2543_v20  ;;  %v2583_v45 = vld [vmem:[#allocation5 + $0x12c] ss:$16 sps:$4 sm:$0xff]   ;;  %v2581_v46 = vld [vmem:[#allocation5 + $0x128] ss:$16 sps:$4 sm:$0xff]   ;;  %v2584_v47 = vld [vmem:[#allocation5 + $0x140] ss:$16 sps:$4 sm:$0xff]  }
  0x5b   :  { %1484 = vmatprep.subr.bf16.mxu1 %v2547_v21  ;;  %v2585_v48 = vld [vmem:[#allocation5 + $0x164] ss:$16 sps:$4 sm:$0xff]   ;;  %v2589_v49 = vld [vmem:[#allocation5 + $0x14c] ss:$16 sps:$4 sm:$0xff]   ;;  %v2587_v50 = vld [vmem:[#allocation5 + $0x148] ss:$16 sps:$4 sm:$0xff]  }
  0x5c   :  { %v2590_v51 = vld [vmem:[#allocation5 + $0x160] ss:$16 sps:$4 sm:$0xff]   ;;  %v2591_v54 = vld [vmem:[#allocation5 + $0x184] ss:$16 sps:$4 sm:$0xff]   ;;  %v2595_v56 = vld [vmem:[#allocation5 + $0x16c] ss:$16 sps:$4 sm:$0xff]  }
  0x5d   :  { %1315 = vmatpush1.bf16.msra.mxu0 %v2548_v23  ;;  %v91_v53 = vld [vmem:[#allocation2 + $0x40] sm:$0xff]  ;;  %v2593_v57 = vld [vmem:[#allocation5 + $0x168] ss:$16 sps:$4 sm:$0xff]   ;;  %v2601_v60 = vld [vmem:[#allocation5 + $0x18c] ss:$16 sps:$4 sm:$0xff]  }
  0x5e   :  { %1485 = vmatpush1.bf16.msra.mxu1 %v2545_v22  ;;  %1316 = vmatprep.subr.bf16.mxu0 %v2549_v24  ;;  %v98_v55 = vpack.c.bf16 %v91_v53, %v84_v52  ;;  %v2596_v58 = vld [vmem:[#allocation5 + $0x180] ss:$16 sps:$4 sm:$0xff]   ;;  %v2597_v59 = vld [vmem:[#allocation5 + $0x1a4] ss:$16 sps:$4 sm:$0xff]   ;;  %v2599_v61 = vld [vmem:[#allocation5 + $0x188] ss:$16 sps:$4 sm:$0xff]  }
  0x5f   :  { %1486 = vmatprep.subr.bf16.mxu1 %v2553_v25  ;;  %v2602_v62 = vld [vmem:[#allocation5 + $0x1a0] ss:$16 sps:$4 sm:$0xff]   ;;  %v2603_v63 = vld [vmem:[#allocation5 + $0x1c4] ss:$16 sps:$4 sm:$0xff]   ;;  %v2607_v1 = vld [vmem:[#allocation5 + $0x1ac] ss:$16 sps:$4 sm:$0xff]  }
  0x60   :  { %1338 = vmatprep.mubr.bf16.mxu0 %v98_v55  ;;  %1510 = vmatprep.mubr.bf16.mxu1 %v98_v55  ;;  %v2605_v2 = vld [vmem:[#allocation5 + $0x1a8] ss:$16 sps:$4 sm:$0xff]   ;;  %v2608_v3 = vld [vmem:[#allocation5 + $0x1c0] ss:$16 sps:$4 sm:$0xff]   ;;  %v2609_v4 = vld [vmem:[#allocation5 + $0x1e4] ss:$16 sps:$4 sm:$0xff]  }
  0x61   :  { %1317 = vmatpush1.bf16.msra.mxu0 %v2554_v27  ;;  %v2613_v5 = vld [vmem:[#allocation5 + $0x1cc] ss:$16 sps:$4 sm:$0xff]   ;;  %v2611_v6 = vld [vmem:[#allocation5 + $0x1c8] ss:$16 sps:$4 sm:$0xff]   ;;  %v2614_v7 = vld [vmem:[#allocation5 + $0x1e0] ss:$16 sps:$4 sm:$0xff]  }
  0x62   :  { %1487 = vmatpush1.bf16.msra.mxu1 %v2551_v26  ;;  %1318 = vmatprep.subr.bf16.mxu0 %v2555_v28  ;;  %v83_v9 = vld [vmem:[#allocation2] sm:$0xff]  ;;  %v90_v10 = vld [vmem:[#allocation2 + $0x38] sm:$0xff] }
  0x63   :  { %1488 = vmatprep.subr.bf16.mxu1 %v2559_v29  ;;  %v2617_v11 = vld [vmem:[#allocation5 + $0x204] ss:$16 sps:$4 sm:$0xff]   ;;  %v2620_v12 = vld [vmem:[#allocation5 + $0x1ec] ss:$16 sps:$4 sm:$0xff]   ;;  %v97_v13 = vpack.c.bf16 %v90_v10, %v83_v9  ;;  %v2615_v14 = vld [vmem:[#allocation5 + $0x200] ss:$16 sps:$4 sm:$0xff]  }
  0x64   :  { %v2618_v15 = vld [vmem:[#allocation5 + $0x1e8] ss:$16 sps:$4 sm:$0xff]   ;;  %v2623_v16 = vld [vmem:[#allocation5 + $0x224] ss:$16 sps:$4 sm:$0xff]   ;;  %v2626_v17 = vld [vmem:[#allocation5 + $0x20c] ss:$16 sps:$4 sm:$0xff]  }
  0x65   :  { %1319 = vmatpush1.bf16.msra.mxu0 %v2560_v31  ;;  %v2621_v18 = vld [vmem:[#allocation5 + $0x220] ss:$16 sps:$4 sm:$0xff]   ;;  %v2624_v19 = vld [vmem:[#allocation5 + $0x208] ss:$16 sps:$4 sm:$0xff]   ;;  %v2629_v20 = vld [vmem:[#allocation5 + $0x244] ss:$16 sps:$4 sm:$0xff]  }
  0x66   :  { %1489 = vmatpush1.bf16.msra.mxu1 %v2557_v30  ;;  %1320 = vmatprep.subr.bf16.mxu0 %v2561_v32  ;;  %v2632_v21 = vld [vmem:[#allocation5 + $0x22c] ss:$16 sps:$4 sm:$0xff]   ;;  %v2627_v22 = vld [vmem:[#allocation5 + $0x240] ss:$16 sps:$4 sm:$0xff]   ;;  %v2630_v23 = vld [vmem:[#allocation5 + $0x228] ss:$16 sps:$4 sm:$0xff]  }
  0x67   :  { %1490 = vmatprep.subr.bf16.mxu1 %v2565_v33  ;;  %v2635_v24 = vld [vmem:[#allocation5 + $0x264] ss:$16 sps:$4 sm:$0xff]   ;;  %v2638_v25 = vld [vmem:[#allocation5 + $0x24c] ss:$16 sps:$4 sm:$0xff]   ;;  %v2633_v26 = vld [vmem:[#allocation5 + $0x260] ss:$16 sps:$4 sm:$0xff]  }
  0x68   :  { %v2636_v27 = vld [vmem:[#allocation5 + $0x248] ss:$16 sps:$4 sm:$0xff]   ;;  %v2641_v28 = vld [vmem:[#allocation5 + $0x284] ss:$16 sps:$4 sm:$0xff]   ;;  %v2644_v29 = vld [vmem:[#allocation5 + $0x26c] ss:$16 sps:$4 sm:$0xff]  }
  0x69   :  { %1321 = vmatpush1.bf16.msra.mxu0 %v2566_v35  ;;  %v2639_v30 = vld [vmem:[#allocation5 + $0x280] ss:$16 sps:$4 sm:$0xff]   ;;  %v2642_v31 = vld [vmem:[#allocation5 + $0x268] ss:$16 sps:$4 sm:$0xff]   ;;  %v2647_v32 = vld [vmem:[#allocation5 + $0x2a4] ss:$16 sps:$4 sm:$0xff]  }
  0x6a   :  { %1491 = vmatpush1.bf16.msra.mxu1 %v2563_v34  ;;  %1322 = vmatprep.subr.bf16.mxu0 %v2567_v36  ;;  %v2650_v33 = vld [vmem:[#allocation5 + $0x28c] ss:$16 sps:$4 sm:$0xff]   ;;  %v2645_v34 = vld [vmem:[#allocation5 + $0x2a0] ss:$16 sps:$4 sm:$0xff]   ;;  %v2648_v35 = vld [vmem:[#allocation5 + $0x288] ss:$16 sps:$4 sm:$0xff]  }
  0x6b   :  { %1492 = vmatprep.subr.bf16.mxu1 %v2571_v37  ;;  %v2653_v36 = vld [vmem:[#allocation5 + $0x2c4] ss:$16 sps:$4 sm:$0xff]   ;;  %v2656_v37 = vld [vmem:[#allocation5 + $0x2ac] ss:$16 sps:$4 sm:$0xff]   ;;  %v2669_v53 = vld [vmem:[#allocation5 + $0x320] ss:$16 sps:$4 sm:$0xff]  }
  0x6c   :  { %v2674_v52 = vld [vmem:[#allocation5 + $0x30c] ss:$16 sps:$4 sm:$0xff]   ;;  %v2677_v55 = vld [vmem:[#allocation5 + $0x344] ss:$16 sps:$4 sm:$0xff]  }
  0x6d   :  { %1323 = vmatpush1.bf16.msra.mxu0 %v2572_v39  ;;  %v2654_v39 = vld [vmem:[#allocation5 + $0x2a8] ss:$16 sps:$4 sm:$0xff]   ;;  %v2701_v9 = vld [vmem:[#allocation5 + $0x3c4] ss:$16 sps:$4 sm:$0xff]   ;;  %v2704_v10 = vld [vmem:[#allocation5 + $0x3ac] ss:$16 sps:$4 sm:$0xff]  }
  0x6e   :  { %1493 = vmatpush1.bf16.msra.mxu1 %v2569_v38  ;;  %1324 = vmatprep.subr.bf16.mxu0 %v2573_v40  ;;  %v2651_v38 = vld [vmem:[#allocation5 + $0x2c0] ss:$16 sps:$4 sm:$0xff]   ;;  %v86_v40 = vld [vmem:[#allocation2 + $0x18] sm:$0xff] }
  0x6f   :  { %1494 = vmatprep.subr.bf16.mxu1 %v2577_v41  ;;  %v93_v41 = vld [vmem:[#allocation2 + $0x50] sm:$0xff] }
  0x71   :  { %1325 = vmatpush1.bf16.msra.mxu0 %v2578_v43  ;;  %v100_v43 = vpack.c.bf16 %v93_v41, %v86_v40  ;;  %v2740_v40 = vld [vmem:[#allocation5 + $0x46c] ss:$16 sps:$4 sm:$0xff]   ;;  %v2735_v41 = vld [vmem:[#allocation5 + $0x480] ss:$16 sps:$4 sm:$0xff]  }
  0x72   :  { %1495 = vmatpush1.bf16.msra.mxu1 %v2575_v42  ;;  %1326 = vmatprep.subr.bf16.mxu0 %v2579_v44  ;;  %v2659_v42 = vld [vmem:[#allocation5 + $0x2e4] ss:$16 sps:$4 sm:$0xff]   ;;  %v2662_v44 = vld [vmem:[#allocation5 + $0x2cc] ss:$16 sps:$4 sm:$0xff]  }
  0x73   :  { %1496 = vmatprep.subr.bf16.mxu1 %v2583_v45  ;;  %v2657_v45 = vld [vmem:[#allocation5 + $0x2e0] ss:$16 sps:$4 sm:$0xff]  }
  0x75   :  { %1327 = vmatpush1.bf16.msra.mxu0 %v2584_v47  ;;  %v2665_v47 = vld [vmem:[#allocation5 + $0x304] ss:$16 sps:$4 sm:$0xff]  }
  0x76   :  { %1497 = vmatpush1.bf16.msra.mxu1 %v2581_v46  ;;  %1328 = vmatprep.subr.bf16.mxu0 %v2585_v48  ;;  %v2660_v46 = vld [vmem:[#allocation5 + $0x2c8] ss:$16 sps:$4 sm:$0xff]   ;;  %v2668_v48 = vld [vmem:[#allocation5 + $0x2ec] ss:$16 sps:$4 sm:$0xff]  }
  0x77   :  { %1498 = vmatprep.subr.bf16.mxu1 %v2589_v49  ;;  %v2663_v49 = vld [vmem:[#allocation5 + $0x300] ss:$16 sps:$4 sm:$0xff]  }
  0x79   :  { %1329 = vmatpush1.bf16.msra.mxu0 %v2590_v51  ;;  %v2671_v51 = vld [vmem:[#allocation5 + $0x324] ss:$16 sps:$4 sm:$0xff]  }
  0x7a   :  { %1499 = vmatpush1.bf16.msra.mxu1 %v2587_v50  ;;  %1330 = vmatprep.subr.bf16.mxu0 %v2591_v54  ;;  %v2666_v50 = vld [vmem:[#allocation5 + $0x2e8] ss:$16 sps:$4 sm:$0xff]  }
  0x7b   :  { %1500 = vmatprep.subr.bf16.mxu1 %v2595_v56  ;;  %v2672_v54 = vld [vmem:[#allocation5 + $0x308] ss:$16 sps:$4 sm:$0xff]   ;;  %v2680_v56 = vld [vmem:[#allocation5 + $0x32c] ss:$16 sps:$4 sm:$0xff]  }
  0x7d   :  { %1331 = vmatpush1.bf16.msra.mxu0 %v2596_v58  ;;  %v2678_v58 = vld [vmem:[#allocation5 + $0x328] ss:$16 sps:$4 sm:$0xff]  }
  0x7e   :  { %1501 = vmatpush1.bf16.msra.mxu1 %v2593_v57  ;;  %1332 = vmatprep.subr.bf16.mxu0 %v2597_v59  ;;  %v2675_v57 = vld [vmem:[#allocation5 + $0x340] ss:$16 sps:$4 sm:$0xff]   ;;  %v2683_v59 = vld [vmem:[#allocation5 + $0x364] ss:$16 sps:$4 sm:$0xff]  }
  0x7f   :  { %1502 = vmatprep.subr.bf16.mxu1 %v2601_v60  ;;  %v2686_v60 = vld [vmem:[#allocation5 + $0x34c] ss:$16 sps:$4 sm:$0xff]  }
  0x81   :  { %1333 = vmatpush1.bf16.msra.mxu0 %v2602_v62  ;;  %v2684_v62 = vld [vmem:[#allocation5 + $0x348] ss:$16 sps:$4 sm:$0xff]  }
  0x82   :  { %1503 = vmatpush1.bf16.msra.mxu1 %v2599_v61  ;;  %1334 = vmatprep.subr.bf16.mxu0 %v2603_v63  ;;  %v2681_v61 = vld [vmem:[#allocation5 + $0x360] ss:$16 sps:$4 sm:$0xff]   ;;  %v2689_v63 = vld [vmem:[#allocation5 + $0x384] ss:$16 sps:$4 sm:$0xff]  }
  0x83   :  { %1504 = vmatprep.subr.bf16.mxu1 %v2607_v1  ;;  %v2692_v1 = vld [vmem:[#allocation5 + $0x36c] ss:$16 sps:$4 sm:$0xff]  }
  0x85   :  { %1335 = vmatpush1.bf16.msra.mxu0 %v2608_v3  ;;  %v2690_v3 = vld [vmem:[#allocation5 + $0x368] ss:$16 sps:$4 sm:$0xff]  }
  0x86   :  { %1505 = vmatpush1.bf16.msra.mxu1 %v2605_v2  ;;  %1336 = vmatprep.subr.bf16.mxu0 %v2609_v4  ;;  %v2687_v2 = vld [vmem:[#allocation5 + $0x380] ss:$16 sps:$4 sm:$0xff]   ;;  %v2695_v4 = vld [vmem:[#allocation5 + $0x3a4] ss:$16 sps:$4 sm:$0xff]  }
  0x87   :  { %1506 = vmatprep.subr.bf16.mxu1 %v2613_v5  ;;  %v2698_v5 = vld [vmem:[#allocation5 + $0x38c] ss:$16 sps:$4 sm:$0xff]  }
  0x89   :  { %1337 = vmatpush1.bf16.msra.mxu0 %v2614_v7  ;;  %v2696_v7 = vld [vmem:[#allocation5 + $0x388] ss:$16 sps:$4 sm:$0xff]  }
  0x8a   :  { %1507 = vmatpush1.bf16.msra.mxu1 %v2611_v6  ;;  %1349 = vmatprep.subr.bf16.mxu0 %v2617_v11  ;;  %v2693_v6 = vld [vmem:[#allocation5 + $0x3a0] ss:$16 sps:$4 sm:$0xff]  }
  0x8b   :  { %1508 = vmatprep.subr.bf16.mxu1 %v2620_v12  ;;  %v2699_v11 = vld [vmem:[#allocation5 + $0x3c0] ss:$16 sps:$4 sm:$0xff]   ;;  %v2702_v12 = vld [vmem:[#allocation5 + $0x3a8] ss:$16 sps:$4 sm:$0xff]  }
  0x8c   :  { %1339 = vmatmul.mubr.bf16.vlgmr.msra.gmra.mrb[0].mxu0 %v97_v13 }
  0x8d   :  { %1350 = vmatpush1.bf16.msra.mxu0 %v2615_v14  ;;  %1381 = vmatprep.mubr.bf16.mxu0 %v100_v43  ;;  %v2710_v14 = vld [vmem:[#allocation5 + $0x3cc] ss:$16 sps:$4 sm:$0xff]  }
  0x8e   :  { %1509 = vmatpush1.bf16.msra.mxu1 %v2618_v15  ;;  %1351 = vmatprep.subr.bf16.mxu0 %v2623_v16  ;;  %v2705_v15 = vld [vmem:[#allocation5 + $0x3e0] ss:$16 sps:$4 sm:$0xff]   ;;  %v2708_v16 = vld [vmem:[#allocation5 + $0x3c8] ss:$16 sps:$4 sm:$0xff]  }
  0x8f   :  { %1521 = vmatprep.subr.bf16.mxu1 %v2626_v17  ;;  %v85_v17 = vld [vmem:[#allocation2 + $0x10] sm:$0xff] }
  0x91   :  { %1511 = vmatmul.mubr.bf16.vlgmr.msra.gmra.mrb[4].mxu1 %v97_v13  ;;  %1352 = vmatpush1.bf16.msra.mxu0 %v2621_v18  ;;  %v2707_v13 = vld [vmem:[#allocation5 + $0x3e4] ss:$16 sps:$4 sm:$0xff]   ;;  %v92_v18 = vld [vmem:[#allocation2 + $0x48] sm:$0xff] }
  0x92   :  { %1522 = vmatpush1.bf16.msra.mxu1 %v2624_v19  ;;  %1353 = vmatprep.subr.bf16.mxu0 %v2629_v20  ;;  %v2713_v19 = vld [vmem:[#allocation5 + $0x404] ss:$16 sps:$4 sm:$0xff]   ;;  %v2716_v20 = vld [vmem:[#allocation5 + $0x3ec] ss:$16 sps:$4 sm:$0xff]  }
  0x93   :  { %1523 = vmatprep.subr.bf16.mxu1 %v2632_v21  ;;  %1553 = vmatprep.mubr.bf16.mxu1 %v100_v43  ;;  %v99_v21 = vpack.c.bf16 %v92_v18, %v85_v17  ;;  %v2743_v43 = vld [vmem:[#allocation5 + $0x4a4] ss:$16 sps:$4 sm:$0xff]   ;;  %v2800_v18 = vld [vmem:[#allocation5 + $0x5ac] ss:$16 sps:$4 sm:$0xff]  }
  0x94   :  { %v2797_v17 = vld [vmem:[#allocation5 + $0x5c4] ss:$16 sps:$4 sm:$0xff]  }
  0x95   :  { %1354 = vmatpush1.bf16.msra.mxu0 %v2627_v22  ;;  %v2711_v22 = vld [vmem:[#allocation5 + $0x400] ss:$16 sps:$4 sm:$0xff]  }
  0x96   :  { %1524 = vmatpush1.bf16.msra.mxu1 %v2630_v23  ;;  %1355 = vmatprep.subr.bf16.mxu0 %v2635_v24  ;;  %v2714_v23 = vld [vmem:[#allocation5 + $0x3e8] ss:$16 sps:$4 sm:$0xff]   ;;  %v2719_v24 = vld [vmem:[#allocation5 + $0x424] ss:$16 sps:$4 sm:$0xff]  }
  0x97   :  { %1525 = vmatprep.subr.bf16.mxu1 %v2638_v25  ;;  %v2722_v25 = vld [vmem:[#allocation5 + $0x40c] ss:$16 sps:$4 sm:$0xff]  }
  0x99   :  { %1356 = vmatpush1.bf16.msra.mxu0 %v2633_v26  ;;  %v88_v26 = vld [vmem:[#allocation2 + $0x28] sm:$0xff] }
  0x9a   :  { %1526 = vmatpush1.bf16.msra.mxu1 %v2636_v27  ;;  %1357 = vmatprep.subr.bf16.mxu0 %v2641_v28  ;;  %v95_v27 = vld [vmem:[#allocation2 + $0x60] sm:$0xff] }
  0x9b   :  { %1527 = vmatprep.subr.bf16.mxu1 %v2644_v29  ;;  %v2717_v28 = vld [vmem:[#allocation5 + $0x420] ss:$16 sps:$4 sm:$0xff]   ;;  %v2720_v29 = vld [vmem:[#allocation5 + $0x408] ss:$16 sps:$4 sm:$0xff]  }
  0x9d   :  { %1358 = vmatpush1.bf16.msra.mxu0 %v2639_v30  ;;  %v102_v30 = vpack.c.bf16 %v95_v27, %v88_v26  ;;  %v94_v26 = vld [vmem:[#allocation2 + $0x58] sm:$0xff] }
  0x9e   :  { %1528 = vmatpush1.bf16.msra.mxu1 %v2642_v31  ;;  %1359 = vmatprep.subr.bf16.mxu0 %v2647_v32  ;;  %v2725_v31 = vld [vmem:[#allocation5 + $0x444] ss:$16 sps:$4 sm:$0xff]   ;;  %v2728_v32 = vld [vmem:[#allocation5 + $0x42c] ss:$16 sps:$4 sm:$0xff]  }
  0x9f   :  { %1529 = vmatprep.subr.bf16.mxu1 %v2650_v33  ;;  %v2723_v33 = vld [vmem:[#allocation5 + $0x440] ss:$16 sps:$4 sm:$0xff]   ;;  %v2809_v27 = vld [vmem:[#allocation5 + $0x5ec] ss:$16 sps:$4 sm:$0xff]  }
  0xa1   :  { %1360 = vmatpush1.bf16.msra.mxu0 %v2645_v34  ;;  %v2726_v34 = vld [vmem:[#allocation5 + $0x428] ss:$16 sps:$4 sm:$0xff]  }
  0xa2   :  { %1530 = vmatpush1.bf16.msra.mxu1 %v2648_v35  ;;  %1361 = vmatprep.subr.bf16.mxu0 %v2653_v36  ;;  %v2731_v35 = vld [vmem:[#allocation5 + $0x464] ss:$16 sps:$4 sm:$0xff]   ;;  %v2734_v36 = vld [vmem:[#allocation5 + $0x44c] ss:$16 sps:$4 sm:$0xff]  }
  0xa3   :  { %1531 = vmatprep.subr.bf16.mxu1 %v2656_v37  ;;  %v2729_v37 = vld [vmem:[#allocation5 + $0x460] ss:$16 sps:$4 sm:$0xff]  }
  0xa5   :  { %1362 = vmatpush1.bf16.msra.mxu0 %v2651_v38  ;;  %v2732_v38 = vld [vmem:[#allocation5 + $0x448] ss:$16 sps:$4 sm:$0xff]  }
  0xa6   :  { %1532 = vmatpush1.bf16.msra.mxu1 %v2654_v39  ;;  %1363 = vmatprep.subr.bf16.mxu0 %v2659_v42  ;;  %v2737_v39 = vld [vmem:[#allocation5 + $0x484] ss:$16 sps:$4 sm:$0xff]   ;;  %v2738_v42 = vld [vmem:[#allocation5 + $0x468] ss:$16 sps:$4 sm:$0xff]  }
  0xa7   :  { %1533 = vmatprep.subr.bf16.mxu1 %v2662_v44  ;;  %v2746_v44 = vld [vmem:[#allocation5 + $0x48c] ss:$16 sps:$4 sm:$0xff]  }
  0xa9   :  { %1364 = vmatpush1.bf16.msra.mxu0 %v2657_v45  ;;  %v2741_v45 = vld [vmem:[#allocation5 + $0x4a0] ss:$16 sps:$4 sm:$0xff]  }
  0xaa   :  { %1534 = vmatpush1.bf16.msra.mxu1 %v2660_v46  ;;  %1365 = vmatprep.subr.bf16.mxu0 %v2665_v47  ;;  %v2744_v46 = vld [vmem:[#allocation5 + $0x488] ss:$16 sps:$4 sm:$0xff]   ;;  %v2749_v47 = vld [vmem:[#allocation5 + $0x4c4] ss:$16 sps:$4 sm:$0xff]  }
  0xab   :  { %1535 = vmatprep.subr.bf16.mxu1 %v2668_v48  ;;  %v2752_v48 = vld [vmem:[#allocation5 + $0x4ac] ss:$16 sps:$4 sm:$0xff]  }
  0xad   :  { %1366 = vmatpush1.bf16.msra.mxu0 %v2663_v49  ;;  %v2747_v49 = vld [vmem:[#allocation5 + $0x4c0] ss:$16 sps:$4 sm:$0xff]  }
  0xae   :  { %1536 = vmatpush1.bf16.msra.mxu1 %v2666_v50  ;;  %1367 = vmatprep.subr.bf16.mxu0 %v2671_v51  ;;  %v2750_v50 = vld [vmem:[#allocation5 + $0x4a8] ss:$16 sps:$4 sm:$0xff]   ;;  %v2755_v51 = vld [vmem:[#allocation5 + $0x4e4] ss:$16 sps:$4 sm:$0xff]  }
  0xaf   :  { %1537 = vmatprep.subr.bf16.mxu1 %v2674_v52  ;;  %v2758_v52 = vld [vmem:[#allocation5 + $0x4cc] ss:$16 sps:$4 sm:$0xff]  }
  0xb1   :  { %1368 = vmatpush1.bf16.msra.mxu0 %v2669_v53  ;;  %v2753_v53 = vld [vmem:[#allocation5 + $0x4e0] ss:$16 sps:$4 sm:$0xff]  }
  0xb2   :  { %1538 = vmatpush1.bf16.msra.mxu1 %v2672_v54  ;;  %1369 = vmatprep.subr.bf16.mxu0 %v2677_v55  ;;  %v2756_v54 = vld [vmem:[#allocation5 + $0x4c8] ss:$16 sps:$4 sm:$0xff]   ;;  %v2761_v55 = vld [vmem:[#allocation5 + $0x504] ss:$16 sps:$4 sm:$0xff]  }
  0xb3   :  { %1539 = vmatprep.subr.bf16.mxu1 %v2680_v56  ;;  %v2764_v56 = vld [vmem:[#allocation5 + $0x4ec] ss:$16 sps:$4 sm:$0xff]  }
  0xb5   :  { %1370 = vmatpush1.bf16.msra.mxu0 %v2675_v57  ;;  %v2759_v57 = vld [vmem:[#allocation5 + $0x500] ss:$16 sps:$4 sm:$0xff]  }
  0xb6   :  { %1540 = vmatpush1.bf16.msra.mxu1 %v2678_v58  ;;  %1371 = vmatprep.subr.bf16.mxu0 %v2683_v59  ;;  %v2762_v58 = vld [vmem:[#allocation5 + $0x4e8] ss:$16 sps:$4 sm:$0xff]   ;;  %v2767_v59 = vld [vmem:[#allocation5 + $0x524] ss:$16 sps:$4 sm:$0xff]  }
  0xb7   :  { %1541 = vmatprep.subr.bf16.mxu1 %v2686_v60  ;;  %v2770_v60 = vld [vmem:[#allocation5 + $0x50c] ss:$16 sps:$4 sm:$0xff]  }
  0xb9   :  { %1372 = vmatpush1.bf16.msra.mxu0 %v2681_v61  ;;  %v2765_v61 = vld [vmem:[#allocation5 + $0x520] ss:$16 sps:$4 sm:$0xff]  }
  0xba   :  { %1542 = vmatpush1.bf16.msra.mxu1 %v2684_v62  ;;  %1373 = vmatprep.subr.bf16.mxu0 %v2689_v63  ;;  %v2768_v62 = vld [vmem:[#allocation5 + $0x508] ss:$16 sps:$4 sm:$0xff]   ;;  %v2773_v63 = vld [vmem:[#allocation5 + $0x544] ss:$16 sps:$4 sm:$0xff]  }
  0xbb   :  { %1543 = vmatprep.subr.bf16.mxu1 %v2692_v1  ;;  %v2776_v1 = vld [vmem:[#allocation5 + $0x52c] ss:$16 sps:$4 sm:$0xff]  }
  0xbd   :  { %1374 = vmatpush1.bf16.msra.mxu0 %v2687_v2  ;;  %v2771_v2 = vld [vmem:[#allocation5 + $0x540] ss:$16 sps:$4 sm:$0xff]  }
  0xbe   :  { %1544 = vmatpush1.bf16.msra.mxu1 %v2690_v3  ;;  %1375 = vmatprep.subr.bf16.mxu0 %v2695_v4  ;;  %v2774_v3 = vld [vmem:[#allocation5 + $0x528] ss:$16 sps:$4 sm:$0xff]   ;;  %v2779_v4 = vld [vmem:[#allocation5 + $0x564] ss:$16 sps:$4 sm:$0xff]  }
  0xbf   :  { %1545 = vmatprep.subr.bf16.mxu1 %v2698_v5  ;;  %v2782_v5 = vld [vmem:[#allocation5 + $0x54c] ss:$16 sps:$4 sm:$0xff]  }
  0xc1   :  { %1376 = vmatpush1.bf16.msra.mxu0 %v2693_v6  ;;  %v2777_v6 = vld [vmem:[#allocation5 + $0x560] ss:$16 sps:$4 sm:$0xff]  }
  0xc2   :  { %1546 = vmatpush1.bf16.msra.mxu1 %v2696_v7  ;;  %1377 = vmatprep.subr.bf16.mxu0 %v2701_v9  ;;  %v2780_v7 = vld [vmem:[#allocation5 + $0x548] ss:$16 sps:$4 sm:$0xff]   ;;  %v2785_v9 = vld [vmem:[#allocation5 + $0x584] ss:$16 sps:$4 sm:$0xff]  }
  0xc3   :  { %1547 = vmatprep.subr.bf16.mxu1 %v2704_v10  ;;  %v2788_v10 = vld [vmem:[#allocation5 + $0x56c] ss:$16 sps:$4 sm:$0xff]  }
  0xc5   :  { %1378 = vmatpush1.bf16.msra.mxu0 %v2699_v11  ;;  %v2783_v11 = vld [vmem:[#allocation5 + $0x580] ss:$16 sps:$4 sm:$0xff]  }
  0xc6   :  { %1548 = vmatpush1.bf16.msra.mxu1 %v2702_v12  ;;  %1379 = vmatprep.subr.bf16.mxu0 %v2707_v13  ;;  %v2786_v12 = vld [vmem:[#allocation5 + $0x568] ss:$16 sps:$4 sm:$0xff]   ;;  %v2791_v13 = vld [vmem:[#allocation5 + $0x5a4] ss:$16 sps:$4 sm:$0xff]  }
  0xc7   :  { %1549 = vmatprep.subr.bf16.mxu1 %v2710_v14  ;;  %v2794_v14 = vld [vmem:[#allocation5 + $0x58c] ss:$16 sps:$4 sm:$0xff]  }
  0xc9   :  { %1380 = vmatpush1.bf16.msra.mxu0 %v2705_v15  ;;  %v2789_v15 = vld [vmem:[#allocation5 + $0x5a0] ss:$16 sps:$4 sm:$0xff]  }
  0xca   :  { %1550 = vmatpush1.bf16.msra.mxu1 %v2708_v16  ;;  %1392 = vmatprep.subr.bf16.mxu0 %v2713_v19  ;;  %v2792_v16 = vld [vmem:[#allocation5 + $0x588] ss:$16 sps:$4 sm:$0xff]   ;;  %v2795_v19 = vld [vmem:[#allocation5 + $0x5c0] ss:$16 sps:$4 sm:$0xff]  }
  0xcb   :  { %1551 = vmatprep.subr.bf16.mxu1 %v2716_v20  ;;  %v2798_v20 = vld [vmem:[#allocation5 + $0x5a8] ss:$16 sps:$4 sm:$0xff]  }
  0xcc   :  { %1382 = vmatmul.mubr.bf16.vlgmr.msra.gmra.mrb[0].mxu0 %v99_v21 }
  0xcd   :  { %1393 = vmatpush1.bf16.msra.mxu0 %v2711_v22  ;;  %1424 = vmatprep.mubr.bf16.mxu0 %v102_v30  ;;  %v2806_v22 = vld [vmem:[#allocation5 + $0x5cc] ss:$16 sps:$4 sm:$0xff]  }
  0xce   :  { %1552 = vmatpush1.bf16.msra.mxu1 %v2714_v23  ;;  %1394 = vmatprep.subr.bf16.mxu0 %v2719_v24  ;;  %v2801_v23 = vld [vmem:[#allocation5 + $0x5e0] ss:$16 sps:$4 sm:$0xff]   ;;  %v2804_v24 = vld [vmem:[#allocation5 + $0x5c8] ss:$16 sps:$4 sm:$0xff]  }
  0xcf   :  { %1564 = vmatprep.subr.bf16.mxu1 %v2722_v25  ;;  %v87_v25 = vld [vmem:[#allocation2 + $0x20] sm:$0xff] }
  0xd1   :  { %1554 = vmatmul.mubr.bf16.vlgmr.msra.gmra.mrb[4].mxu1 %v99_v21  ;;  %1395 = vmatpush1.bf16.msra.mxu0 %v2717_v28  ;;  %v2803_v21 = vld [vmem:[#allocation5 + $0x5e4] ss:$16 sps:$4 sm:$0xff]  }
  0xd2   :  { %1565 = vmatpush1.bf16.msra.mxu1 %v2720_v29  ;;  %1396 = vmatprep.subr.bf16.mxu0 %v2725_v31  ;;  %v2813_v28 = vld [vmem:[#allocation7 + $0x40] sm:$0xff]   ;;  %v101_v29 = vpack.c.bf16 %v94_v26, %v87_v25 }
  0xd3   :  { %1566 = vmatprep.subr.bf16.mxu1 %v2728_v32  ;;  %1596 = vmatprep.mubr.bf16.mxu1 %v102_v30  ;;  %v2807_v30 = vld [vmem:[#allocation5 + $0x5e8] ss:$16 sps:$4 sm:$0xff]   ;;  %v2814_v31 = vld [vmem:[#allocation7] sm:$0xff]   ;;  %v2812_v32 = vld [vmem:[#allocation5 + $0x60c] ss:$16 sps:$4 sm:$0xff]  }
  0xd5   :  { %1397 = vmatpush1.bf16.msra.mxu0 %v2723_v33  ;;  %v2815_v33 = vld [vmem:[#allocation7 + $0x48] sm:$0xff]  }
  0xd6   :  { %1567 = vmatpush1.bf16.msra.mxu1 %v2726_v34  ;;  %1398 = vmatprep.subr.bf16.mxu0 %v2731_v35  ;;  %v2810_v34 = vld [vmem:[#allocation5 + $0x608] ss:$16 sps:$4 sm:$0xff]  }
  0xd7   :  { %1568 = vmatprep.subr.bf16.mxu1 %v2734_v36  ;;  %v2816_v35 = vld [vmem:[#allocation7 + $0x8] sm:$0xff]   ;;  %v2821_v36 = vld [vmem:[#allocation7 + $0xc0] sm:$0xff]  }
  0xd9   :  { %1399 = vmatpush1.bf16.msra.mxu0 %v2729_v37  ;;  %v2817_v37 = vld [vmem:[#allocation7 + $0x50] sm:$0xff]  }
  0xda   :  { %1569 = vmatpush1.bf16.msra.mxu1 %v2732_v38  ;;  %1400 = vmatprep.subr.bf16.mxu0 %v2737_v39  ;;  %v2818_v38 = vld [vmem:[#allocation7 + $0x10] sm:$0xff]   ;;  %v2819_v39 = vld [vmem:[#allocation7 + $0x58] sm:$0xff]  }
  0xdb   :  { %1570 = vmatprep.subr.bf16.mxu1 %v2740_v40  ;;  %v2820_v40 = vld [vmem:[#allocation7 + $0x18] sm:$0xff]  }
  0xdd   :  { %1401 = vmatpush1.bf16.msra.mxu0 %v2735_v41  ;;  %v2823_v41 = vld [vmem:[#allocation7 + $0x60] sm:$0xff]  }
  0xde   :  { %1571 = vmatpush1.bf16.msra.mxu1 %v2738_v42  ;;  %1402 = vmatprep.subr.bf16.mxu0 %v2743_v43  ;;  %v2822_v42 = vld [vmem:[#allocation7 + $0x80] sm:$0xff]  }
  0xdf   :  { %1572 = vmatprep.subr.bf16.mxu1 %v2746_v44  ;;  %v2824_v43 = vld [vmem:[#allocation7 + $0x20] sm:$0xff]   ;;  %v2825_v44 = vld [vmem:[#allocation7 + $0xc8] sm:$0xff]  }
  0xe1   :  { %1403 = vmatpush1.bf16.msra.mxu0 %v2741_v45 }
  0xe2   :  { %1573 = vmatpush1.bf16.msra.mxu1 %v2744_v46  ;;  %1404 = vmatprep.subr.bf16.mxu0 %v2749_v47 }
  0xe3   :  { %1574 = vmatprep.subr.bf16.mxu1 %v2752_v48  ;;  %v2826_v48 = vld [vmem:[#allocation7 + $0x88] sm:$0xff]  }
  0xe5   :  { %1405 = vmatpush1.bf16.msra.mxu0 %v2747_v49  ;;  %v2827_v49 = vld [vmem:[#allocation7 + $0x68] sm:$0xff]  }
  0xe6   :  { %1575 = vmatpush1.bf16.msra.mxu1 %v2750_v50  ;;  %1406 = vmatprep.subr.bf16.mxu0 %v2755_v51  ;;  %v2828_v50 = vld [vmem:[#allocation7 + $0x28] sm:$0xff]   ;;  %v2829_v51 = vld [vmem:[#allocation7 + $0xd0] sm:$0xff]  }
  0xe7   :  { %1576 = vmatprep.subr.bf16.mxu1 %v2758_v52  ;;  %v2830_v52 = vld [vmem:[#allocation7 + $0x90] sm:$0xff]  }
  0xe9   :  { %1407 = vmatpush1.bf16.msra.mxu0 %v2753_v53  ;;  %v2831_v53 = vld [vmem:[#allocation7 + $0x70] sm:$0xff]  }
  0xea   :  { %1577 = vmatpush1.bf16.msra.mxu1 %v2756_v54  ;;  %1408 = vmatprep.subr.bf16.mxu0 %v2761_v55  ;;  %v2832_v54 = vld [vmem:[#allocation7 + $0x30] sm:$0xff]   ;;  %v2834_v55 = vld [vmem:[#allocation7 + $0x98] sm:$0xff]  }
  0xeb   :  { %1578 = vmatprep.subr.bf16.mxu1 %v2764_v56  ;;  %v2835_v56 = vld [vmem:[#allocation7 + $0x78] sm:$0xff]  }
  0xed   :  { %1409 = vmatpush1.bf16.msra.mxu0 %v2759_v57  ;;  %v2836_v57 = vld [vmem:[#allocation7 + $0x38] sm:$0xff]  }
  0xee   :  { %1579 = vmatpush1.bf16.msra.mxu1 %v2762_v58  ;;  %1410 = vmatprep.subr.bf16.mxu0 %v2767_v59  ;;  %v2837_v58 = vld [vmem:[#allocation7 + $0xe0] sm:$0xff]  }
  0xef   :  { %1580 = vmatprep.subr.bf16.mxu1 %v2770_v60  ;;  %v2838_v59 = vld [vmem:[#allocation7 + $0xa0] sm:$0xff]   ;;  %v2839_v60 = vld [vmem:[#allocation7 + $0xe8] sm:$0xff]  }
  0xf1   :  { %1411 = vmatpush1.bf16.msra.mxu0 %v2765_v61  ;;  %v2840_v61 = vld [vmem:[#allocation7 + $0xa8] sm:$0xff]  }
  0xf2   :  { %1581 = vmatpush1.bf16.msra.mxu1 %v2768_v62  ;;  %1412 = vmatprep.subr.bf16.mxu0 %v2773_v63  ;;  %v2841_v62 = vld [vmem:[#allocation7 + $0xf0] sm:$0xff]  }
  0xf3   :  { %1582 = vmatprep.subr.bf16.mxu1 %v2776_v1  ;;  %v2842_v63 = vld [vmem:[#allocation7 + $0xb0] sm:$0xff]   ;;  %v2843_v1 = vld [vmem:[#allocation7 + $0xf8] sm:$0xff]  }
  0xf5   :  { %1413 = vmatpush1.bf16.msra.mxu0 %v2771_v2  ;;  %v2844_v2 = vld [vmem:[#allocation7 + $0xb8] sm:$0xff]  }
  0xf6   :  { %1583 = vmatpush1.bf16.msra.mxu1 %v2774_v3  ;;  %1414 = vmatprep.subr.bf16.mxu0 %v2779_v4  ;;  %v2982_v3 = vmov 0.0   ;;  %v302_v4 = vlaneseq }
  0xf7   :  { %1584 = vmatprep.subr.bf16.mxu1 %v2782_v5 }
  0xf8   :  { %v303_v5 = vshrl.u32 %v302_v4, 7 }
  0xf9   :  { %1415 = vmatpush1.bf16.msra.mxu0 %v2777_v6 }
  0xfa   :  { %1585 = vmatpush1.bf16.msra.mxu1 %v2780_v7  ;;  %1416 = vmatprep.subr.bf16.mxu0 %v2785_v9  ;;  %v304_v6 = vsub.s32 0, %v303_v5  ;;  %v300_v7 = vld [vmem:[%s3122_s2] sm:$0xf]  ;;  %v308_v9 = vsub.s32 1, %v303_v5 }
  0xfb   :  { %1586 = vmatprep.subr.bf16.mxu1 %v2788_v10 }
  0xfc   :  { %v305_v10 = vrot.slane %v300_v7, %v304_v6 }
  0xfd   :  { %1417 = vmatpush1.bf16.msra.mxu0 %v2783_v11  ;;  %v309_v11 = vrot.slane %v300_v7, %v308_v9 }
  0xfe   :  { %1587 = vmatpush1.bf16.msra.mxu1 %v2786_v12  ;;  %1418 = vmatprep.subr.bf16.mxu0 %v2791_v13 }
  0xff   :  { %1588 = vmatprep.subr.bf16.mxu1 %v2794_v14 }
 0x101   :  { %1419 = vmatpush1.bf16.msra.mxu0 %v2789_v15 }
 0x102   :  { %1589 = vmatpush1.bf16.msra.mxu1 %v2792_v16  ;;  %1420 = vmatprep.subr.bf16.mxu0 %v2797_v17 }
 0x103   :  { %1590 = vmatprep.subr.bf16.mxu1 %v2800_v18 }
 0x105   :  { %1421 = vmatpush1.bf16.msra.mxu0 %v2795_v19 }
 0x106   :  { %1591 = vmatpush1.bf16.msra.mxu1 %v2798_v20  ;;  %1422 = vmatprep.subr.bf16.mxu0 %v2803_v21 }
 0x107   :  { %1592 = vmatprep.subr.bf16.mxu1 %v2806_v22 }
 0x109   :  { %1423 = vmatpush1.bf16.msra.mxu0 %v2801_v23 }
 0x10a   :  { %1593 = vmatpush1.bf16.msra.mxu1 %v2804_v24  ;;  %2400 = vmatprep.subr.bf16.mxu0 %v2813_v28 }
 0x10b   :  { %1594 = vmatprep.subr.bf16.mxu1 %v2809_v27 }
 0x10c   :  { %1425 = vmatmul.mubr.bf16.vlgmr.msra.gmra.mrb[0].mxu0 %v101_v29 }
 0x10d   :  { %2401 = vmatpush3.bf16.msra.mxu0 %v2814_v31  ;;  %v316_v31 = vsub.s32 3, %v303_v5 }
 0x10e   :  { %1595 = vmatpush1.bf16.msra.mxu1 %v2807_v30  ;;  %2402 = vmatprep.subr.bf16.mxu0 %v2815_v33 }
 0x10f   :  { %1607 = vmatprep.subr.bf16.mxu1 %v2812_v32  ;;  %v2845_v32 = vld [vmem:[#allocation8] sm:$0xff]  }
 0x111   :  { %1597 = vmatmul.mubr.bf16.vlgmr.msra.gmra.mrb[4].mxu1 %v101_v29  ;;  %2403 = vmatpush3.bf16.msra.mxu0 %v2816_v35  ;;  %v312_v29 = vsub.s32 2, %v303_v5  ;;  %v2846_v35 = vld [vmem:[#allocation8 + $0x8] sm:$0xff]  }
 0x112   :  { %1608 = vmatpush1.bf16.msra.mxu1 %v2810_v34  ;;  %1639 = vmatprep.mubr.bf16.mxu1 %v2981_v0  ;;  %v317_v34 = vrot.slane %v300_v7, %v316_v31 }
 0x113   :  { %2422 = vmatprep.subr.bf16.mxu1 %v2821_v36  ;;  %2404 = vmatprep.subr.bf16.mxu0 %v2817_v37  ;;  %v313_v33 = vrot.slane %v300_v7, %v312_v29 }
 0x115   :  { %2405 = vmatpush3.bf16.msra.mxu0 %v2818_v38 }
 0x116   :  { %2406 = vmatprep.subr.bf16.mxu0 %v2819_v39 }
 0x119   :  { %2407 = vmatpush3.bf16.msra.mxu0 %v2820_v40 }
 0x11a   :  { %2408 = vmatprep.subr.bf16.mxu0 %v2823_v41 }
 0x11d   :  { %2348 = vmatmul.mubr.msk.bf16.vlgmr.msra.gmra.mrb[4].mxu1 %vm1302_vm0, %v3080_v8  ;;  %2409 = vmatpush3.bf16.msra.mxu0 %v2824_v43  ;;  %v2833_v8 = vld [vmem:[#allocation7 + $0xd8] sm:$0xff]  }
 0x11e   :  { %2423 = vmatpush3.bf16.msra.mxu1 %v2822_v42  ;;  %2410 = vmatprep.subr.bf16.mxu0 %v2827_v49  ;;  %v2847_v49 = vld [vmem:[#allocation8 + $0x10] sm:$0xff]  }
 0x11f   :  { %2424 = vmatprep.subr.bf16.mxu1 %v2825_v44 }
 0x121   :  { %2411 = vmatpush3.bf16.msra.mxu0 %v2828_v50  ;;  %v2848_v50 = vld [vmem:[#allocation8 + $0x18] sm:$0xff]  }
 0x122   :  { %2425 = vmatpush3.bf16.msra.mxu1 %v2826_v48  ;;  %2412 = vmatprep.subr.bf16.mxu0 %v2831_v53  ;;  %v2851_v53 = vld [vmem:[#allocation8 + $0x30] sm:$0xff]  }
 0x123   :  { %2426 = vmatprep.subr.bf16.mxu1 %v2829_v51  ;;  %v2849_v51 = vld [vmem:[#allocation8 + $0x20] sm:$0xff]  }
 0x124   :  { %v1469_v0 = vpop.f32.mrb[0].mxu1 }
 0x125   :  { %v1471_v45 = vpop.f32.mrb[1].mxu1  ;;  %2413 = vmatpush3.bf16.msra.mxu0 %v2832_v54  ;;  %v2852_v54 = vld [vmem:[#allocation8 + $0x38] sm:$0xff]  }
 0x126   :  { %v1473_v46 = vpop.f32.mrb[2].mxu1  ;;  %2427 = vmatpush3.bf16.msra.mxu1 %v2830_v52  ;;  %2414 = vmatprep.subr.bf16.mxu0 %v2835_v56  ;;  %v2850_v52 = vld [vmem:[#allocation8 + $0x28] sm:$0xff]  }
 0x127   :  { %v1475_v47 = vpop.f32.mrb[3].mxu1  ;;  %2428 = vmatprep.subr.bf16.mxu1 %v2833_v8 }
 0x129   :  { %2415 = vmatpush3.bf16.msra.mxu0 %v2836_v57 }
 0x12a   :  { %2429 = vmatpush3.bf16.msra.mxu1 %v2834_v55  ;;  %2453 = vmatprep.subr.bf16.mxu0 %v2982_v3 }
 0x12b   :  { %2430 = vmatprep.subr.bf16.mxu1 %v2837_v58 }
 0x12e   :  { %2431 = vmatpush3.bf16.msra.mxu1 %v2838_v59 }
 0x12f   :  { %2432 = vmatprep.subr.bf16.mxu1 %v2839_v60  ;;  %v2349_v60 = vld [vmem:[%s3124_s4] ss:$0 sm:$0xff]  ;;  %s2984_s4 = smov [#allocation10]  }
 0x130   :  { %s2137_s9 = sshll.u32 %s2984_s4, 4  ;;  %s2138_s9 = int_to_ptr.vmem [resolvable:$true] %s2137_s9 }
 0x131   :  { %s2941_s10 = scalar_lea.vmem %s2138_s9, 128  ;;  %p2946_p5 = scmp.lt.s32.totalorder %s2138_s9, %s2138_s9 }
 0x132   :  { %2433 = vmatpush3.bf16.msra.mxu1 %v2840_v61  ;;  %p2942_p4 = scmp.ne.s32.totalorder %s2138_s9, %s2941_s10  ;;  %p2947_p6 = scmp.lt.s32.totalorder %s2941_s10, %s2941_s10 }
 0x133   :  { %2434 = vmatprep.subr.bf16.mxu1 %v2841_v62 }
 0x134   :  { %p2948_p7 = por %p2947_p6, %p2946_p5 }
 0x136   :  { %2435 = vmatpush3.bf16.msra.mxu1 %v2842_v63  ;;  %p2949_p8 = pnand %p2948_p7, %p2942_p4 }
 0x137   :  { %2436 = vmatprep.subr.bf16.mxu1 %v2843_v1 }
 0x13a   :  { %2437 = vmatpush3.bf16.msra.mxu1 %v2844_v2 }
 0x1df   :  { %v1426_v12 = vpop.f32.mrb[0].mxu0 }
 0x1e0   :  { %v2473_v13 = vadd.f32 %v1426_v12, %v305_v10  ;;  %v1428_v14 = vpop.f32.mrb[1].mxu0  ;;  %v2382_v12 = vld [vmem:[%s3126_s6] ss:$0 sm:$0xff] }
 0x1e1   :  { %v2475_v15 = vadd.f32 %v1428_v14, %v309_v11  ;;  %v1430_v16 = vpop.f32.mrb[2].mxu0 }
 0x1e2   :  { %v2474_v17 = vadd.f32 %v2473_v13, %v1469_v0  ;;  %v2477_v18 = vadd.f32 %v1430_v16, %v305_v10  ;;  %v1432_v19 = vpop.f32.mrb[3].mxu0 }
 0x1e3   :  { %v2476_v20 = vadd.f32 %v2475_v15, %v1471_v45  ;;  %v2479_v21 = vadd.f32 %v1432_v19, %v309_v11 }
 0x1e4   :  { %v2478_v22 = vadd.f32 %v2477_v18, %v1473_v46  ;;  %v1650_v24 = vmax.f32 %v2474_v17, 0.0 }
 0x1e5   :  { %v2480_v23 = vadd.f32 %v2479_v21, %v1475_v47  ;;  %v1651_v26 = vmax.f32 %v2476_v20, 0.0 }
 0x1e6   :  { %v1654_v25 = vmax.f32 %v2478_v22, 0.0 }
 0x1e7   :  { %v1655_v27 = vmax.f32 %v2480_v23, 0.0 }
 0x1e8   :  { %v1658_v28 = vpack.c.bf16 %v1654_v25, %v1650_v24 }
 0x1e9   :  { %v1659_v30 = vpack.c.bf16 %v1655_v27, %v1651_v26 }
 0x1eb   :  { %1957 = vmatprep.mubr.bf16.mxu0 %v1659_v30 }
 0x1ec   :  { %1958 = vmatmul.mubr.bf16.vlgmr.msra.gmra.mrb[4].mxu0 %v1658_v28 }
 0x1ed   :  { %2454 = vmatpush3.bf16.msra.mxu0 %v2845_v32  ;;  %2469 = vmatprep.mubr.msk.bf16.mxu0 %vm2983_vm1, %v2982_v3 }
 0x1ee   :  { %2455 = vmatprep.subr.bf16.mxu0 %v2982_v3 }
 0x1f0   :  { %v1641_v36 = vpop.f32.mrb[4].mxu1 }
 0x1f1   :  { %v2481_v37 = vadd.f32 %v1641_v36, %v313_v33  ;;  %v1643_v38 = vpop.f32.mrb[5].mxu1  ;;  %2456 = vmatpush3.bf16.msra.mxu0 %v2846_v35 }
 0x1f2   :  { %v2482_v39 = vadd.f32 %v1643_v38, %v317_v34  ;;  %v1645_v40 = vpop.f32.mrb[6].mxu1  ;;  %2457 = vmatprep.subr.bf16.mxu0 %v2982_v3 }
 0x1f3   :  { %v2483_v41 = vadd.f32 %v1645_v40, %v313_v33  ;;  %v1647_v42 = vpop.f32.mrb[7].mxu1  ;;  %v1652_v44 = vmax.f32 %v2481_v37, 0.0 }
 0x1f4   :  { %v2484_v43 = vadd.f32 %v1647_v42, %v317_v34  ;;  %v1653_v45 = vmax.f32 %v2482_v39, 0.0 }
 0x1f5   :  { %v1656_v0 = vmax.f32 %v2483_v41, 0.0  ;;  %2458 = vmatpush3.bf16.msra.mxu0 %v2847_v49 }
 0x1f6   :  { %v1657_v46 = vmax.f32 %v2484_v43, 0.0  ;;  %2459 = vmatprep.subr.bf16.mxu0 %v2982_v3 }
 0x1f7   :  { %v1660_v47 = vpack.c.bf16 %v1656_v0, %v1652_v44 }
 0x1f8   :  { %v1661_v48 = vpack.c.bf16 %v1657_v46, %v1653_v45 }
 0x1f9   :  { %2460 = vmatpush3.bf16.msra.mxu0 %v2848_v50 }
 0x1fa   :  { %1998 = vmatprep.mubr.bf16.mxu1 %v1661_v48  ;;  %2461 = vmatprep.subr.bf16.mxu0 %v2982_v3 }
 0x1fb   :  { %1999 = vmatmul.mubr.bf16.vlgmr.msra.gmra.mrb[8].mxu1 %v1660_v47 }
 0x1fd   :  { %2462 = vmatpush3.bf16.msra.mxu0 %v2849_v51 }
 0x1fe   :  { %2463 = vmatprep.subr.bf16.mxu0 %v2982_v3 }
 0x201   :  { %2464 = vmatpush3.bf16.msra.mxu0 %v2850_v52 }
 0x202   :  { %2465 = vmatprep.subr.bf16.mxu0 %v2982_v3 }
 0x205   :  { %2466 = vmatpush3.bf16.msra.mxu0 %v2851_v53 }
 0x206   :  { %2467 = vmatprep.subr.bf16.mxu0 %v2982_v3 }
 0x209   :  { %2468 = vmatpush3.bf16.msra.mxu0 %v2852_v54 }
 0x2bf   :  { %v2416_v8 = vpop.f32.mrb[4].mxu0 }
 0x2c0   :  { %v2417_v55 = vpop.f32.mrb[5].mxu0 }
 0x2c1   :  { %v2418_v56 = vadd.f32 %v2417_v55, %v2416_v8  ;;  %v2419_v57 = vpop.f32.mrb[6].mxu0 }
 0x2c2   :  { %v2420_v58 = vpop.f32.mrb[7].mxu0 }
 0x2c3   :  { %v2421_v59 = vadd.f32 %v2420_v58, %v2419_v57  ;;  %v1960_v63 = vadd.f32 %v2418_v56, %v2349_v60 }
 0x2c5   :  { %v1963_v5 = vadd.f32 %v2421_v59, %v2349_v60 }
 0x2ce   :  { %v2438_v61 = vpop.f32.mrb[8].mxu1 }
 0x2cf   :  { %v2439_v62 = vpop.f32.mrb[9].mxu1 }
 0x2d0   :  { %v2440_v1 = vadd.f32 %v2439_v62, %v2438_v61  ;;  %v2441_v2 = vpop.f32.mrb[10].mxu1 }
 0x2d1   :  { %v2442_v4 = vpop.f32.mrb[11].mxu1 }
 0x2d2   :  { %v2001_v6 = vadd.f32 %v2440_v1, %v1960_v63  ;;  %v2443_v7 = vadd.f32 %v2442_v4, %v2441_v2 }
 0x2d4   :  { %v2004_v3 = vadd.f32 %v2443_v7, %v1963_v5  ;;  %v2007_v9 = vmax.f32 %v2001_v6, 0.0 }
 0x2d6   :  { %v2008_v10 = vmax.f32 %v2004_v3, 0.0 }
 0x2d8   :  { %v2009_v11 = vpack.c.bf16 %v2008_v10, %v2007_v9 }
 0x2da   :  { %2470 = vmatmul.mubr.bf16.vlgmr.msra.gmra.mrb[8].mxu0 %v2009_v11 }
 0x3ad   :  { %v2115_v13 = vpop.f32.mrb[8].mxu0 }
 0x3ae   :  { %v2471_v14 = vpop.f32.mrb[9].mxu0  ;;  %v2116_v16 = vadd.f32 %v2382_v12, %v2115_v13 }
 0x3af   :  { %v2118_v15 = vpop.f32.mrb[10].mxu0 }
 0x3b0   :  { %v2119_v17 = vadd.f32 %v2382_v12, %v2118_v15  ;;  %v2472_v18 = vpop.f32.mrb[11].mxu0 }
 0x3b2   :  { %v2398_v19 = vpack.c.bf16 %v2119_v17, %v2116_v16 }
 0x3b4   :  { %2399 = vst [vmem:[#allocation10] sm:$0xff] %v2398_v19  }
 0x3b5   :  { %2952 = shalt.err (!%p2949_p8)
}
 0x3b6   :  { %s2953_s12 = scalar_lea.hbm %s3127_s7, 128 }
 0x3b7   :  { %p2954_p9 = scmp.ne.s32.totalorder %s3127_s7, %s2953_s12  ;;  %p2957_p10 = scmp.lt.u32.totalorder %s2953_s12, %s3127_s7 }
 0x3b9   :  { %p2959_p11 = pnand %p2957_p10, %p2954_p9 }
 0x3bb   :  { %2962 = shalt.err (!%p2959_p11)
}
 0x3bc   :  { %2143 = dma.vmem_to_hbm [thread:$0]  %s2138_s9, 128, %s3127_s7, [#allocation4], %s2978_s0, %s2978_s0, %s2979_s15  }
 0x3bd   :  { %2969 = dma.done.wait [#allocation4], 128  }
 0x3be   :  { %2970 = vsyncadd [#allocation4], 4294967168 }
 0x3bf   :  { %2147 = vsyncpa [#allocation3], 1 }
 0x3c0   :  { %2148 = vsyncpa [#allocation6], 1 }
 0x3c1   :  { %2149 = vsyncpa [#allocation9], 1 }
 0x3c2   :  { %2150 = vsyncpa [#allocation4], 1 }

</bundles_post_ra>
